<compile_context>
chip_gen: v5e
topology: v5e:2x2
jax: 0.10.0
libtpu: 0.0.40
codegen_flags: <defaults>
</compile_context>

<pallas_src>
import functools

import jax
import jax.numpy as jnp
from jax.experimental import pallas as pl
from jax.experimental.pallas import tpu as pltpu

LEAKY_SLOPE = 0.01   # nn.LeakyReLU default
BN_EPS = 1e-5        # nn.BatchNorm1d default
LANE = 128           # TPU lane width — pad final class dim to this for dense stores
NEG_BIG = -1e30      # bias for padded class lanes; exp() underflows to 0 in LogSoftmax


def _gcn_fused_kernel(*refs, num_layers, skip_connection):
    """Whole GCNModel forward, all layers fused, everything resident in VMEM.

    refs = (fea, adj_norm, [wlin, blin, wgcn, bgcn] * num_layers, out)
    Per layer: Linear(BN folded) -> Dropout(id) -> LeakyReLU -> GCNConv;
    final layer additionally applies LogSoftmax(dim=1) over the padded lanes.
    """
    fea_ref, adj_ref = refs[0], refs[1]
    out_ref = refs[-1]
    layer_refs = refs[2:-1]

    adj = adj_ref[...]                           # (N, N) bf16 normalized adjacency
    x = fea_ref[...].astype(jnp.float32)         # (N, F) activations (f32 chain)

    for i in range(num_layers):
        wlin, blin, wgcn, bgcn = layer_refs[4 * i: 4 * i + 4]

        # self.linear with eval-mode BN folded in, then Dropout(id) + LeakyReLU
        h = jnp.dot(x.astype(jnp.bfloat16), wlin[...],
                    preferred_element_type=jnp.float32) + blin[...]
        h = jnp.where(h >= 0, h, LEAKY_SLOPE * h)

        # self.gcn = GCNConv: A_norm @ (h @ W_gcn) + b_gcn
        h = jnp.dot(h.astype(jnp.bfloat16), wgcn[...],
                    preferred_element_type=jnp.float32)
        h = jnp.dot(adj, h.astype(jnp.bfloat16),
                    preferred_element_type=jnp.float32) + bgcn[...]

        if i == num_layers - 1:
            # LogSoftmax(dim=1); padded lanes carry a -1e30 bias -> exp == 0.
            m = jnp.max(h, axis=1, keepdims=True)
            s = h - m
            lse = jnp.log(jnp.sum(jnp.exp(s), axis=1, keepdims=True))
            out_ref[...] = (s - lse).astype(out_ref.dtype)   # lane-dense (N, 128) store
        elif skip_connection and i > 0:
            x = h + x
        else:
            x = h


def normalize_adj(adj):
    """GCNConv normalization (hoisted, one-time): D^-1/2 (A + I) D^-1/2."""
    n = adj.shape[0]
    a_hat = adj + jnp.eye(n, dtype=adj.dtype)
    deg = a_hat.sum(axis=1)
    d_inv_sqrt = jnp.where(deg > 0, 1.0 / jnp.sqrt(deg), 0.0)
    return a_hat * d_inv_sqrt[:, None] * d_inv_sqrt[None, :]


def init_layer_params(key, in_dim, out_dim):
    """Deterministic synthetic parameters matching the PyTorch module's shapes."""
    k1, k2, k3, k4 = jax.random.split(key, 4)
    return {
        # nn.Linear(in_dim, in_dim) — stored pre-transposed as (in, in)
        "wlin": 0.1 * jax.random.normal(k1, (in_dim, in_dim), jnp.float32),
        "blin": 0.1 * jax.random.normal(k2, (1, in_dim), jnp.float32),
        # nn.BatchNorm1d(in_dim) fresh-init running stats / affine params
        "gamma": jnp.ones((1, in_dim), jnp.float32),
        "beta": jnp.zeros((1, in_dim), jnp.float32),
        "mean": jnp.zeros((1, in_dim), jnp.float32),
        "var": jnp.ones((1, in_dim), jnp.float32),
        # GCNConv(in_dim, out_dim) — weight (in, out) + bias
        "wgcn": 0.1 * jax.random.normal(k3, (in_dim, out_dim), jnp.float32),
        "bgcn": 0.1 * jax.random.normal(k4, (1, out_dim), jnp.float32),
    }


def prepare_params(params):
    """One-time prep: fold eval-mode BN into the Linear, cast matmul weights to
    bf16, and pad the final layer's class dim to a 128-lane-dense width (padded
    lanes get a -1e30 bias so the in-kernel LogSoftmax ignores them)."""
    prepped = []
    last = len(params) - 1
    for i, p in enumerate(params):
        scale = p["gamma"] * jax.lax.rsqrt(p["var"] + BN_EPS)          # (1, in)
        wlin = p["wlin"] * scale                                        # scale per output column
        blin = (p["blin"] - p["mean"]) * scale + p["beta"]
        wgcn, bgcn = p["wgcn"], p["bgcn"]
        if i == last:
            out_dim = wgcn.shape[1]
            pad_to = ((out_dim + LANE - 1) // LANE) * LANE
            pad = pad_to - out_dim
            wgcn = jnp.pad(wgcn, ((0, 0), (0, pad)))
            bgcn = jnp.pad(bgcn, ((0, 0), (0, pad)), constant_values=NEG_BIG)
        prepped.append({
            "wlin": wlin.astype(jnp.bfloat16),
            "blin": blin.astype(jnp.float32),
            "wgcn": wgcn.astype(jnp.bfloat16),
            "bgcn": bgcn.astype(jnp.float32),
        })
    return prepped


def gcn_model_forward(fea, adj_norm, prepped, *, num_classes, skip_connection=False):
    """Single fused pallas_call over all layers (whole problem resident in VMEM).

    TODO(synk): for large N (v7x VMEM is 64 MiB) switch to a row-tiled grid over
    adj_norm with dimension_semantics=("parallel",) — unnecessary at N=64.
    """
    n = fea.shape[0]
    num_layers = len(prepped)
    pad_to = prepped[-1]["wgcn"].shape[1]

    flat = []
    for p in prepped:
        flat += [p["wlin"], p["blin"], p["wgcn"], p["bgcn"]]

    kernel = functools.partial(_gcn_fused_kernel, num_layers=num_layers,
                               skip_connection=skip_connection)
    vmem = pl.BlockSpec(memory_space=pltpu.MemorySpace.VMEM)

    out_padded = pl.pallas_call(
        kernel,
        out_shape=jax.ShapeDtypeStruct((n, pad_to), jnp.float32),
        in_specs=[vmem] * (2 + len(flat)),
        out_specs=vmem,
    )(fea, adj_norm.astype(jnp.bfloat16), *flat)

    return out_padded[:, :num_classes]


if __name__ == "__main__":
    # Small deterministic problem: N=64 nodes, 8 features, hidden 32, 4 classes, 3 layers.
    N, NUM_FEATURES, HIDDEN, NUM_CLASSES, NUM_LAYERS = 64, 8, 32, 4, 3

    key = jax.random.PRNGKey(0)
    k_x, k_adj, k_params = jax.random.split(key, 3)

    x = jax.random.normal(k_x, (N, NUM_FEATURES), jnp.float32)

    # deterministic sparse-ish symmetric adjacency (no self loops; GCNConv adds them)
    rnd = jax.random.uniform(k_adj, (N, N))
    adj = jnp.where(rnd > 0.85, 1.0, 0.0).astype(jnp.float32)
    adj = jnp.maximum(adj, adj.T) * (1.0 - jnp.eye(N, dtype=jnp.float32))

    # layer dims: (F -> H), (H -> H), ..., (H -> C)
    dims = []
    in_dim, out_dim = NUM_FEATURES, HIDDEN
    for _ in range(NUM_LAYERS - 1):
        dims.append((in_dim, out_dim))
        in_dim, out_dim = HIDDEN, HIDDEN
    dims.append((in_dim, NUM_CLASSES))

    layer_keys = jax.random.split(k_params, NUM_LAYERS)
    params = [init_layer_params(k, di, do) for k, (di, do) in zip(layer_keys, dims)]

    # One-time hoisted prep: GCN normalization + BN folding + bf16 weight cast.
    adj_norm = normalize_adj(adj)
    prepped = prepare_params(params)

    fwd = jax.jit(functools.partial(gcn_model_forward,
                                    num_classes=NUM_CLASSES,
                                    skip_connection=False))
    out = fwd(x, adj_norm, prepped)
    out = jax.block_until_ready(out)

    assert out.shape == (N, NUM_CLASSES)
    # rows of LogSoftmax output must exponentiate-sum to 1
    assert bool(jnp.allclose(jnp.exp(out).sum(axis=1), 1.0, atol=1e-4))
    print("KERNEL_OK")
</pallas_src>

<mosaic_0001>
module attributes {stable_mosaic.version = 11 : i64} {
  func.func @_gcn_fused_kernel(%arg0: memref<64x8xf32, #tpu.memory_space<vmem>>, %arg1: memref<64x64xbf16, #tpu.memory_space<vmem>>, %arg2: memref<8x8xbf16, #tpu.memory_space<vmem>>, %arg3: memref<1x8xf32, #tpu.memory_space<vmem>>, %arg4: memref<8x32xbf16, #tpu.memory_space<vmem>>, %arg5: memref<1x32xf32, #tpu.memory_space<vmem>>, %arg6: memref<32x32xbf16, #tpu.memory_space<vmem>>, %arg7: memref<1x32xf32, #tpu.memory_space<vmem>>, %arg8: memref<32x32xbf16, #tpu.memory_space<vmem>>, %arg9: memref<1x32xf32, #tpu.memory_space<vmem>>, %arg10: memref<32x32xbf16, #tpu.memory_space<vmem>>, %arg11: memref<1x32xf32, #tpu.memory_space<vmem>>, %arg12: memref<32x128xbf16, #tpu.memory_space<vmem>>, %arg13: memref<1x128xf32, #tpu.memory_space<vmem>>, %arg14: memref<64x128xf32, #tpu.memory_space<vmem>>) attributes {dimension_semantics = [], scalar_prefetch = 0 : i64, scratch_operands = 0 : i64, tpu.core_type = #tpu.core_type<tc>} {
    %c0 = arith.constant 0 : index
    %c0_0 = arith.constant 0 : index
    %0 = vector.load %arg1[%c0, %c0_0] : memref<64x64xbf16, #tpu.memory_space<vmem>>, vector<64x64xbf16>
    %c0_1 = arith.constant 0 : index
    %c0_2 = arith.constant 0 : index
    %1 = vector.load %arg0[%c0_1, %c0_2] : memref<64x8xf32, #tpu.memory_space<vmem>>, vector<64x8xf32>
    %2 = arith.truncf %1 : vector<64x8xf32> to vector<64x8xbf16>
    %c0_3 = arith.constant 0 : index
    %c0_4 = arith.constant 0 : index
    %3 = vector.load %arg2[%c0_3, %c0_4] : memref<8x8xbf16, #tpu.memory_space<vmem>>, vector<8x8xbf16>
    %cst = arith.constant dense<0.000000e+00> : vector<64x8xf32>
    %4 = tpu.matmul %2, %3, %cst {dimension_numbers = #tpu.dot_dimension_numbers<[1], [0], [0], [1], [0, 0, 1, 1], [], []>} : vector<64x8xbf16>, vector<8x8xbf16>, vector<64x8xf32> -> vector<64x8xf32>
    %c0_5 = arith.constant 0 : index
    %c0_6 = arith.constant 0 : index
    %5 = vector.load %arg3[%c0_5, %c0_6] : memref<1x8xf32, #tpu.memory_space<vmem>>, vector<1x8xf32>
    %6 = vector.broadcast %5 : vector<1x8xf32> to vector<64x8xf32>
    %7 = arith.addf %4, %6 : vector<64x8xf32>
    %cst_7 = arith.constant 0.000000e+00 : f32
    %8 = vector.broadcast %cst_7 : f32 to vector<64x8xf32>
    %9 = arith.cmpf oge, %7, %8 : vector<64x8xf32>
    %cst_8 = arith.constant 0.00999999977 : f32
    %10 = vector.broadcast %cst_8 : f32 to vector<64x8xf32>
    %11 = arith.mulf %10, %7 : vector<64x8xf32>
    %12 = arith.select %9, %7, %11 : vector<64x8xi1>, vector<64x8xf32>
    %13 = arith.truncf %12 : vector<64x8xf32> to vector<64x8xbf16>
    %c0_9 = arith.constant 0 : index
    %c0_10 = arith.constant 0 : index
    %14 = vector.load %arg4[%c0_9, %c0_10] : memref<8x32xbf16, #tpu.memory_space<vmem>>, vector<8x32xbf16>
    %cst_11 = arith.constant dense<0.000000e+00> : vector<64x32xf32>
    %15 = tpu.matmul %13, %14, %cst_11 {dimension_numbers = #tpu.dot_dimension_numbers<[1], [0], [0], [1], [0, 0, 1, 1], [], []>} : vector<64x8xbf16>, vector<8x32xbf16>, vector<64x32xf32> -> vector<64x32xf32>
    %16 = arith.truncf %15 : vector<64x32xf32> to vector<64x32xbf16>
    %cst_12 = arith.constant dense<0.000000e+00> : vector<64x32xf32>
    %17 = tpu.matmul %0, %16, %cst_12 {dimension_numbers = #tpu.dot_dimension_numbers<[1], [0], [0], [1], [0, 0, 1, 1], [], []>} : vector<64x64xbf16>, vector<64x32xbf16>, vector<64x32xf32> -> vector<64x32xf32>
    %c0_13 = arith.constant 0 : index
    %c0_14 = arith.constant 0 : index
    %18 = vector.load %arg5[%c0_13, %c0_14] : memref<1x32xf32, #tpu.memory_space<vmem>>, vector<1x32xf32>
    %19 = vector.broadcast %18 : vector<1x32xf32> to vector<64x32xf32>
    %20 = arith.addf %17, %19 : vector<64x32xf32>
    %21 = arith.truncf %20 : vector<64x32xf32> to vector<64x32xbf16>
    %c0_15 = arith.constant 0 : index
    %c0_16 = arith.constant 0 : index
    %22 = vector.load %arg6[%c0_15, %c0_16] : memref<32x32xbf16, #tpu.memory_space<vmem>>, vector<32x32xbf16>
    %cst_17 = arith.constant dense<0.000000e+00> : vector<64x32xf32>
    %23 = tpu.matmul %21, %22, %cst_17 {dimension_numbers = #tpu.dot_dimension_numbers<[1], [0], [0], [1], [0, 0, 1, 1], [], []>} : vector<64x32xbf16>, vector<32x32xbf16>, vector<64x32xf32> -> vector<64x32xf32>
    %c0_18 = arith.constant 0 : index
    %c0_19 = arith.constant 0 : index
    %24 = vector.load %arg7[%c0_18, %c0_19] : memref<1x32xf32, #tpu.memory_space<vmem>>, vector<1x32xf32>
    %25 = vector.broadcast %24 : vector<1x32xf32> to vector<64x32xf32>
    %26 = arith.addf %23, %25 : vector<64x32xf32>
    %cst_20 = arith.constant 0.000000e+00 : f32
    %27 = vector.broadcast %cst_20 : f32 to vector<64x32xf32>
    %28 = arith.cmpf oge, %26, %27 : vector<64x32xf32>
    %cst_21 = arith.constant 0.00999999977 : f32
    %29 = vector.broadcast %cst_21 : f32 to vector<64x32xf32>
    %30 = arith.mulf %29, %26 : vector<64x32xf32>
    %31 = arith.select %28, %26, %30 : vector<64x32xi1>, vector<64x32xf32>
    %32 = arith.truncf %31 : vector<64x32xf32> to vector<64x32xbf16>
    %c0_22 = arith.constant 0 : index
    %c0_23 = arith.constant 0 : index
    %33 = vector.load %arg8[%c0_22, %c0_23] : memref<32x32xbf16, #tpu.memory_space<vmem>>, vector<32x32xbf16>
    %cst_24 = arith.constant dense<0.000000e+00> : vector<64x32xf32>
    %34 = tpu.matmul %32, %33, %cst_24 {dimension_numbers = #tpu.dot_dimension_numbers<[1], [0], [0], [1], [0, 0, 1, 1], [], []>} : vector<64x32xbf16>, vector<32x32xbf16>, vector<64x32xf32> -> vector<64x32xf32>
    %35 = arith.truncf %34 : vector<64x32xf32> to vector<64x32xbf16>
    %cst_25 = arith.constant dense<0.000000e+00> : vector<64x32xf32>
    %36 = tpu.matmul %0, %35, %cst_25 {dimension_numbers = #tpu.dot_dimension_numbers<[1], [0], [0], [1], [0, 0, 1, 1], [], []>} : vector<64x64xbf16>, vector<64x32xbf16>, vector<64x32xf32> -> vector<64x32xf32>
    %c0_26 = arith.constant 0 : index
    %c0_27 = arith.constant 0 : index
    %37 = vector.load %arg9[%c0_26, %c0_27] : memref<1x32xf32, #tpu.memory_space<vmem>>, vector<1x32xf32>
    %38 = vector.broadcast %37 : vector<1x32xf32> to vector<64x32xf32>
    %39 = arith.addf %36, %38 : vector<64x32xf32>
    %40 = arith.truncf %39 : vector<64x32xf32> to vector<64x32xbf16>
    %c0_28 = arith.constant 0 : index
    %c0_29 = arith.constant 0 : index
    %41 = vector.load %arg10[%c0_28, %c0_29] : memref<32x32xbf16, #tpu.memory_space<vmem>>, vector<32x32xbf16>
    %cst_30 = arith.constant dense<0.000000e+00> : vector<64x32xf32>
    %42 = tpu.matmul %40, %41, %cst_30 {dimension_numbers = #tpu.dot_dimension_numbers<[1], [0], [0], [1], [0, 0, 1, 1], [], []>} : vector<64x32xbf16>, vector<32x32xbf16>, vector<64x32xf32> -> vector<64x32xf32>
    %c0_31 = arith.constant 0 : index
    %c0_32 = arith.constant 0 : index
    %43 = vector.load %arg11[%c0_31, %c0_32] : memref<1x32xf32, #tpu.memory_space<vmem>>, vector<1x32xf32>
    %44 = vector.broadcast %43 : vector<1x32xf32> to vector<64x32xf32>
    %45 = arith.addf %42, %44 : vector<64x32xf32>
    %cst_33 = arith.constant 0.000000e+00 : f32
    %46 = vector.broadcast %cst_33 : f32 to vector<64x32xf32>
    %47 = arith.cmpf oge, %45, %46 : vector<64x32xf32>
    %cst_34 = arith.constant 0.00999999977 : f32
    %48 = vector.broadcast %cst_34 : f32 to vector<64x32xf32>
    %49 = arith.mulf %48, %45 : vector<64x32xf32>
    %50 = arith.select %47, %45, %49 : vector<64x32xi1>, vector<64x32xf32>
    %51 = arith.truncf %50 : vector<64x32xf32> to vector<64x32xbf16>
    %c0_35 = arith.constant 0 : index
    %c0_36 = arith.constant 0 : index
    %52 = vector.load %arg12[%c0_35, %c0_36] : memref<32x128xbf16, #tpu.memory_space<vmem>>, vector<32x128xbf16>
    %cst_37 = arith.constant dense<0.000000e+00> : vector<64x128xf32>
    %53 = tpu.matmul %51, %52, %cst_37 {dimension_numbers = #tpu.dot_dimension_numbers<[1], [0], [0], [1], [0, 0, 1, 1], [], []>} : vector<64x32xbf16>, vector<32x128xbf16>, vector<64x128xf32> -> vector<64x128xf32>
    %54 = arith.truncf %53 : vector<64x128xf32> to vector<64x128xbf16>
    %cst_38 = arith.constant dense<0.000000e+00> : vector<64x128xf32>
    %55 = tpu.matmul %0, %54, %cst_38 {dimension_numbers = #tpu.dot_dimension_numbers<[1], [0], [0], [1], [0, 0, 1, 1], [], []>} : vector<64x64xbf16>, vector<64x128xbf16>, vector<64x128xf32> -> vector<64x128xf32>
    %c0_39 = arith.constant 0 : index
    %c0_40 = arith.constant 0 : index
    %56 = vector.load %arg13[%c0_39, %c0_40] : memref<1x128xf32, #tpu.memory_space<vmem>>, vector<1x128xf32>
    %57 = vector.broadcast %56 : vector<1x128xf32> to vector<64x128xf32>
    %58 = arith.addf %55, %57 : vector<64x128xf32>
    %cst_41 = arith.constant dense<0xFF800000> : vector<64xf32>
    %59 = vector.multi_reduction <maximumf>, %58, %cst_41 [1] : vector<64x128xf32> to vector<64xf32>
    %60 = vector.shape_cast %59 : vector<64xf32> to vector<64x1xf32>
    %61 = vector.broadcast %60 : vector<64x1xf32> to vector<64x128xf32>
    %62 = arith.subf %58, %61 : vector<64x128xf32>
    %63 = math.exp %62 : vector<64x128xf32>
    %cst_42 = arith.constant dense<0.000000e+00> : vector<64xf32>
    %64 = vector.multi_reduction <add>, %63, %cst_42 [1] : vector<64x128xf32> to vector<64xf32>
    %65 = vector.shape_cast %64 : vector<64xf32> to vector<64x1xf32>
    %66 = math.log %65 : vector<64x1xf32>
    %67 = vector.broadcast %66 : vector<64x1xf32> to vector<64x128xf32>
    %68 = arith.subf %62, %67 : vector<64x128xf32>
    %c0_43 = arith.constant 0 : index
    %c0_44 = arith.constant 0 : index
    %69 = vector.load %arg14[%c0_43, %c0_44] : memref<64x128xf32, #tpu.memory_space<vmem>>, vector<64x128xf32>
    tpu.vector_store %arg14[%c0_43, %c0_44], %68 {strides = array<i32>} : memref<64x128xf32, #tpu.memory_space<vmem>>, vector<64x128xf32>,
    return
  }
}

</mosaic_0001>

<bundles_post_ra>
// kernel: gcn_model_forward.1
= control target key start
LH: loop header
LB: loop body
LE: loop exit
PB: predicated region body
PF: predicated region fallthrough
CT: control target
= control target key end

     0   :  { %vm86_vm0 = vcmask 1043456   ;;  %vm73_vm1 = vcmask 64512   ;;  %vm220_vm10 = vcmask 523264   ;;  %vm286_vm11 = vcmask 261120   ;;  %s1107_s2 = inlined_call_operand.vmem [shape: bf16[8,8], index: 2, kind: input, shape index: {}]   ;;  %s1108_s0 = inlined_call_operand.vmem [shape: f32[64,8], index: 0, kind: input, shape index: {}]   ;;  %s1109_s3 = inlined_call_operand.vmem [shape: f32[1,8], index: 3, kind: input, shape index: {}]   ;;  %s1110_s4 = inlined_call_operand.vmem [shape: bf16[8,32], index: 4, kind: input, shape index: {}]   ;;  %s1111_s5 = inlined_call_operand.vmem [shape: f32[1,32], index: 5, kind: input, shape index: {}]   ;;  %s1112_s1 = inlined_call_operand.vmem [shape: bf16[64,64], index: 1, kind: input, shape index: {}]   ;;  %s1113_s7 = inlined_call_operand.vmem [shape: f32[1,32], index: 7, kind: input, shape index: {}]   ;;  %s1114_s6 = inlined_call_operand.vmem [shape: bf16[32,32], index: 6, kind: input, shape index: {}]   ;;  %s1115_s8 = inlined_call_operand.vmem [shape: bf16[32,32], index: 8, kind: input, shape index: {}]   ;;  %s1116_s9 = inlined_call_operand.vmem [shape: f32[1,32], index: 9, kind: input, shape index: {}]   ;;  %s1117_s10 = inlined_call_operand.vmem [shape: bf16[32,32], index: 10, kind: input, shape index: {}]   ;;  %s1118_s11 = inlined_call_operand.vmem [shape: f32[1,32], index: 11, kind: input, shape index: {}]   ;;  %s1119_s12 = inlined_call_operand.vmem [shape: bf16[32,128], index: 12, kind: input, shape index: {}]   ;;  %s1120_s13 = inlined_call_operand.vmem [shape: f32[1,128], index: 13, kind: input, shape index: {}]   ;;  %s1121_s14 = inlined_call_operand.vmem [shape: f32[64,128], index: 14, kind: output, shape index: {}]  }
   0x1   :  { %v68_v0 = vld [vmem:[%s1107_s2] sm:$0xf]  ;;  %v57_v2 = vld [vmem:[%s1108_s0 + $0x8] sm:$0xff]  ;;  %v58_v5 = vld [vmem:[%s1108_s0 + $0x10] sm:$0xff] }
   0x2   :  { %v56_v1 = vld [vmem:[%s1108_s0] sm:$0xff]  ;;  %v88_v3 = vsel %vm86_vm0, %v68_v0, 0  ;;  %v59_v6 = vld [vmem:[%s1108_s0 + $0x18] sm:$0xff]  ;;  %v61_v9 = vld [vmem:[%s1108_s0 + $0x28] sm:$0xff] }
   0x3   :  { %v64_v4 = vpack.c.bf16 %v57_v2, %v56_v1  ;;  %v60_v7 = vld [vmem:[%s1108_s0 + $0x20] sm:$0xff]  ;;  %97 = vmatpush.bf16.msra.mxu0 %v88_v3  ;;  %825 = vmatpush.bf16.msra.mxu1 %v88_v3  ;;  %v65_v8 = vpack.c.bf16 %v59_v6, %v58_v5  ;;  %v62_v10 = vld [vmem:[%s1108_s0 + $0x30] sm:$0xff]  ;;  %v63_v11 = vld [vmem:[%s1108_s0 + $0x38] sm:$0xff] }
   0x4   :  { %826 = vmatpush.bf16.msra.mxu2 %v88_v3  ;;  %v66_v12 = vpack.c.bf16 %v61_v9, %v60_v7  ;;  %827 = vmatpush.bf16.msra.mxu3 %v88_v3  ;;  %v67_v13 = vpack.c.bf16 %v63_v11, %v62_v10  ;;  %v147_v14 = vld [vmem:[%s1110_s4] sm:$0xf]  ;;  %v994_v2 = vld [vmem:[%s1112_s1 + $0x8] sm:$0xff]  ;;  %v1001_v3 = vld [vmem:[%s1112_s1 + $0x10] sm:$0xff] }
   0x5   :  { %v161_v15 = vsel %vm86_vm0, %v147_v14, 0  ;;  %v828_v17 = vld [vmem:[%s1109_s3] ss:$0 sm:$0xff]  ;;  %v818_v5 = vld [vmem:[%s1114_s6 + $0x8] sm:$0xff] }
   0x6   :  { %729 = vmatmul.msk.bf16.vlgmr.msra.gmra.mxu0 %vm73_vm1, %v64_v4  ;;  %730 = vmatmul.msk.bf16.vlgmr.msra.gmra.mxu1 %vm73_vm1, %v65_v8  ;;  %v987_v1 = vld [vmem:[%s1112_s1] sm:$0xff]  ;;  %v1008_v4 = vld [vmem:[%s1112_s1 + $0x18] sm:$0xff] }
   0x7   :  { %731 = vmatmul.msk.bf16.vlgmr.msra.gmra.mxu2 %vm73_vm1, %v66_v12  ;;  %732 = vmatmul.msk.bf16.vlgmr.msra.gmra.mxu3 %vm73_vm1, %v67_v13  ;;  %v817_v6 = vld [vmem:[%s1114_s6] sm:$0xff] }
   0x8   :  { %170 = vmatpush.bf16.msrb.mxu1 %v161_v15  ;;  %305 = vmatpush.bf16.msrb.mxu3 %v818_v5  ;;  %v829_v8 = vld [vmem:[%s1111_s5] ss:$0 sm:$0xff] }
   0xc   :  { %306 = vmatpush.bf16.msrb.mxu3 %v817_v6 }
  0x83   :  { %v99_v16 = vpop.f32.mrf.mxu0  ;;  %v104_v19 = vpop.f32.mrf.mxu1 }
  0x84   :  { %v100_v18 = vadd.f32 %v828_v17, %v99_v16  ;;  %v105_v28 = vadd.f32 %v828_v17, %v104_v19 }
  0x86   :  { %v127_v21 = vmul.f32 0.01, %v100_v18  ;;  %vm119_vm2 = vcmp.ge.f32.partialorder %v100_v18, 0.0  ;;  %v129_v31 = vmul.f32 0.01, %v105_v28  ;;  %vm121_vm4 = vcmp.ge.f32.partialorder %v105_v28, 0.0 }
  0x88   :  { %v135_v24 = vsel %vm119_vm2, %v100_v18, %v127_v21  ;;  %v137_v33 = vsel %vm121_vm4, %v105_v28, %v129_v31  ;;  %v820_v28 = vld [vmem:[%s1115_s8 + $0x8] sm:$0xff]  ;;  %v830_v31 = vld [vmem:[%s1113_s7] ss:$0 sm:$0xff] }
  0x89   :  { %390 = vmatpush.bf16.msrb.mxu0 %v820_v28 }
  0x8a   :  { %v109_v30 = vpop.f32.mrf.mxu2  ;;  %v114_v39 = vpop.f32.mrf.mxu3 }
  0x8b   :  { %v101_v20 = vpop.f32.mrf.mxu0  ;;  %v106_v27 = vpop.f32.mrf.mxu1  ;;  %v110_v37 = vadd.f32 %v828_v17, %v109_v30  ;;  %v115_v46 = vadd.f32 %v828_v17, %v114_v39 }
  0x8c   :  { %v102_v22 = vadd.f32 %v828_v17, %v101_v20  ;;  %v107_v29 = vadd.f32 %v828_v17, %v106_v27 }
  0x8d   :  { %v131_v40 = vmul.f32 0.01, %v110_v37  ;;  %vm123_vm6 = vcmp.ge.f32.partialorder %v110_v37, 0.0  ;;  %v133_v48 = vmul.f32 0.01, %v115_v46  ;;  %vm125_vm8 = vcmp.ge.f32.partialorder %v115_v46, 0.0 }
  0x8e   :  { %vm120_vm3 = vcmp.ge.f32.partialorder %v102_v22, 0.0  ;;  %v128_v23 = vmul.f32 0.01, %v102_v22  ;;  %v130_v32 = vmul.f32 0.01, %v107_v29  ;;  %vm122_vm5 = vcmp.ge.f32.partialorder %v107_v29, 0.0 }
  0x8f   :  { %v139_v42 = vsel %vm123_vm6, %v110_v37, %v131_v40  ;;  %v141_v50 = vsel %vm125_vm8, %v115_v46, %v133_v48 }
  0x90   :  { %v136_v25 = vsel %vm120_vm3, %v102_v22, %v128_v23  ;;  %v138_v34 = vsel %vm122_vm5, %v107_v29, %v130_v32  ;;  %v819_v29 = vld [vmem:[%s1115_s8] sm:$0xff] }
  0x91   :  { %v143_v26 = vpack.c.bf16 %v136_v25, %v135_v24  ;;  %v144_v35 = vpack.c.bf16 %v138_v34, %v137_v33  ;;  %391 = vmatpush.bf16.msrb.mxu0 %v819_v29 }
  0x92   :  { %v111_v36 = vpop.f32.mrf.mxu2  ;;  %v116_v45 = vpop.f32.mrf.mxu3 }
  0x93   :  { %733 = vmatmul.msk.bf16.vlgmr.msrb.gmra.mxu1 %vm73_vm1, %v143_v26  ;;  %v112_v38 = vadd.f32 %v828_v17, %v111_v36  ;;  %v117_v47 = vadd.f32 %v828_v17, %v116_v45 }
  0x95   :  { %v132_v41 = vmul.f32 0.01, %v112_v38  ;;  %vm124_vm7 = vcmp.ge.f32.partialorder %v112_v38, 0.0  ;;  %v134_v49 = vmul.f32 0.01, %v117_v47  ;;  %vm126_vm9 = vcmp.ge.f32.partialorder %v117_v47, 0.0 }
  0x97   :  { %v140_v43 = vsel %vm124_vm7, %v112_v38, %v132_v41  ;;  %v142_v51 = vsel %vm126_vm9, %v117_v47, %v134_v49 }
  0x98   :  { %v145_v44 = vpack.c.bf16 %v140_v43, %v139_v42  ;;  %v146_v52 = vpack.c.bf16 %v142_v51, %v141_v50 }
  0xa3   :  { %734 = vmatmul.msk.bf16.gmra.mxu1 %vm73_vm1, %v144_v35 }
  0xb3   :  { %735 = vmatmul.msk.bf16.gmra.mxu1 %vm73_vm1, %v145_v44 }
  0xc3   :  { %736 = vmatmul.msk.bf16.gmra.mxu1 %vm73_vm1, %v146_v52 }
 0x110   :  { %v172_v53 = vpop.f32.mrf.mxu1 }
 0x118   :  { %v174_v54 = vpop.f32.mrf.mxu1 }
 0x119   :  { %v192_v0 = vpack.c.bf16 %v174_v54, %v172_v53 }
 0x120   :  { %v177_v55 = vpop.f32.mrf.mxu1 }
 0x128   :  { %v179_v56 = vpop.f32.mrf.mxu1 }
 0x129   :  { %v193_v63 = vpack.c.bf16 %v179_v56, %v177_v55 }
 0x130   :  { %v182_v57 = vpop.f32.mrf.mxu1 }
 0x138   :  { %v184_v58 = vpop.f32.mrf.mxu1 }
 0x139   :  { %v194_v62 = vpack.c.bf16 %v184_v58, %v182_v57 }
 0x140   :  { %v187_v59 = vpop.f32.mrf.mxu1 }
 0x148   :  { %v189_v60 = vpop.f32.mrf.mxu1 }
 0x149   :  { %v195_v61 = vpack.c.bf16 %v189_v60, %v187_v59 }
 0x14b   :  { %237 = vmatpush.bf16.msrb.mxu2 %v195_v61 }
 0x14f   :  { %238 = vmatpush.bf16.msrb.mxu2 %v194_v62 }
 0x153   :  { %239 = vmatpush.bf16.msrb.mxu2 %v193_v63 }
 0x157   :  { %240 = vmatpush.bf16.msrb.mxu2 %v192_v0 }
 0x15a   :  { %753 = vmatmul.msk.bf16.vlgmr.msrb.gmra.mxu2 %vm220_vm10, %v987_v1 }
 0x16a   :  { %754 = vmatmul.msk.bf16.gmra.mxu2 %vm220_vm10, %v994_v2 }
 0x17a   :  { %755 = vmatmul.msk.bf16.gmra.mxu2 %vm220_vm10, %v1001_v3 }
 0x18a   :  { %756 = vmatmul.msk.bf16.gmra.mxu2 %vm220_vm10, %v1008_v4 }
 0x1dd   :  { %v242_v7 = vpop.f32.mrf.mxu2 }
 0x1de   :  { %v243_v10 = vadd.f32 %v829_v8, %v242_v7 }
 0x1e5   :  { %v244_v9 = vpop.f32.mrf.mxu2 }
 0x1e6   :  { %v245_v11 = vadd.f32 %v829_v8, %v244_v9 }
 0x1e8   :  { %v262_v12 = vpack.c.bf16 %v245_v11, %v243_v10 }
 0x1ea   :  { %765 = vmatmul.msk.bf16.vlgmr.msrb.gmra.mxu3 %vm286_vm11, %v262_v12 }
 0x1ed   :  { %v247_v13 = vpop.f32.mrf.mxu2 }
 0x1ee   :  { %v248_v15 = vadd.f32 %v829_v8, %v247_v13 }
 0x1f5   :  { %v249_v14 = vpop.f32.mrf.mxu2 }
 0x1f6   :  { %v250_v16 = vadd.f32 %v829_v8, %v249_v14 }
 0x1f8   :  { %v263_v17 = vpack.c.bf16 %v250_v16, %v248_v15 }
 0x1fa   :  { %766 = vmatmul.msk.bf16.gmra.mxu3 %vm286_vm11, %v263_v17 }
 0x1fd   :  { %v252_v18 = vpop.f32.mrf.mxu2 }
 0x1fe   :  { %v253_v20 = vadd.f32 %v829_v8, %v252_v18 }
 0x205   :  { %v254_v19 = vpop.f32.mrf.mxu2 }
 0x206   :  { %v255_v21 = vadd.f32 %v829_v8, %v254_v19  ;;  %v822_v19 = vld [vmem:[%s1117_s10 + $0x8] sm:$0xff] }
 0x207   :  { %492 = vmatpush.bf16.msra.mxu3 %v822_v19 }
 0x208   :  { %v264_v22 = vpack.c.bf16 %v255_v21, %v253_v20  ;;  %v821_v20 = vld [vmem:[%s1117_s10] sm:$0xff] }
 0x20a   :  { %767 = vmatmul.msk.bf16.gmra.mxu3 %vm286_vm11, %v264_v22  ;;  %v831_v22 = vld [vmem:[%s1116_s9] ss:$0 sm:$0xff] }
 0x20b   :  { %493 = vmatpush.bf16.msra.mxu3 %v821_v20 }
 0x20d   :  { %v257_v23 = vpop.f32.mrf.mxu2 }
 0x20e   :  { %v258_v25 = vadd.f32 %v829_v8, %v257_v23 }
 0x215   :  { %v259_v24 = vpop.f32.mrf.mxu2 }
 0x216   :  { %v260_v26 = vadd.f32 %v829_v8, %v259_v24 }
 0x218   :  { %v265_v27 = vpack.c.bf16 %v260_v26, %v258_v25 }
 0x21a   :  { %768 = vmatmul.msk.bf16.gmra.mxu3 %vm286_vm11, %v265_v27 }
 0x26d   :  { %v308_v30 = vpop.f32.mrf.mxu3 }
 0x26e   :  { %v309_v32 = vadd.f32 %v830_v31, %v308_v30 }
 0x270   :  { %v336_v34 = vmul.f32 0.01, %v309_v32  ;;  %vm328_vm12 = vcmp.ge.f32.partialorder %v309_v32, 0.0 }
 0x272   :  { %v344_v37 = vsel %vm328_vm12, %v309_v32, %v336_v34 }
 0x275   :  { %v310_v33 = vpop.f32.mrf.mxu3 }
 0x276   :  { %v311_v35 = vadd.f32 %v830_v31, %v310_v33 }
 0x278   :  { %vm329_vm13 = vcmp.ge.f32.partialorder %v311_v35, 0.0  ;;  %v337_v36 = vmul.f32 0.01, %v311_v35 }
 0x27a   :  { %v345_v38 = vsel %vm329_vm13, %v311_v35, %v337_v36 }
 0x27b   :  { %v352_v39 = vpack.c.bf16 %v345_v38, %v344_v37 }
 0x27d   :  { %v313_v40 = vpop.f32.mrf.mxu3  ;;  %777 = vmatmul.msk.bf16.vlgmr.msrb.gmra.mxu0 %vm286_vm11, %v352_v39 }
 0x27e   :  { %v314_v41 = vadd.f32 %v830_v31, %v313_v40 }
 0x280   :  { %v338_v43 = vmul.f32 0.01, %v314_v41  ;;  %vm330_vm14 = vcmp.ge.f32.partialorder %v314_v41, 0.0 }
 0x282   :  { %v346_v46 = vsel %vm330_vm14, %v314_v41, %v338_v43  ;;  %v823_v43 = vld [vmem:[%s1119_s12] sm:$0xff] }
 0x285   :  { %v315_v42 = vpop.f32.mrf.mxu3 }
 0x286   :  { %v316_v44 = vadd.f32 %v830_v31, %v315_v42  ;;  %v824_v42 = vld [vmem:[%s1119_s12 + $0x8] sm:$0xff] }
 0x287   :  { %577 = vmatpush.bf16.msra.mxu2 %v824_v42 }
 0x288   :  { %vm331_vm15 = vcmp.ge.f32.partialorder %v316_v44, 0.0  ;;  %v339_v45 = vmul.f32 0.01, %v316_v44 }
 0x28a   :  { %v347_v47 = vsel %vm331_vm15, %v316_v44, %v339_v45  ;;  %v832_v45 = vld [vmem:[%s1118_s11] ss:$0 sm:$0xff] }
 0x28b   :  { %v353_v48 = vpack.c.bf16 %v347_v47, %v346_v46  ;;  %578 = vmatpush.bf16.msra.mxu2 %v823_v43 }
 0x28d   :  { %v318_v49 = vpop.f32.mrf.mxu3  ;;  %778 = vmatmul.msk.bf16.gmra.mxu0 %vm286_vm11, %v353_v48 }
 0x28e   :  { %v319_v50 = vadd.f32 %v830_v31, %v318_v49 }
 0x290   :  { %v340_v52 = vmul.f32 0.01, %v319_v50  ;;  %vm332_vm0 = vcmp.ge.f32.partialorder %v319_v50, 0.0 }
 0x292   :  { %v348_v55 = vsel %vm332_vm0, %v319_v50, %v340_v52 }
 0x295   :  { %v320_v51 = vpop.f32.mrf.mxu3 }
 0x296   :  { %v321_v53 = vadd.f32 %v830_v31, %v320_v51 }
 0x298   :  { %vm333_vm1 = vcmp.ge.f32.partialorder %v321_v53, 0.0  ;;  %v341_v54 = vmul.f32 0.01, %v321_v53 }
 0x29a   :  { %v349_v56 = vsel %vm333_vm1, %v321_v53, %v341_v54 }
 0x29b   :  { %v354_v57 = vpack.c.bf16 %v349_v56, %v348_v55 }
 0x29d   :  { %v323_v58 = vpop.f32.mrf.mxu3  ;;  %779 = vmatmul.msk.bf16.gmra.mxu0 %vm286_vm11, %v354_v57 }
 0x29e   :  { %v324_v59 = vadd.f32 %v830_v31, %v323_v58 }
 0x2a0   :  { %v342_v61 = vmul.f32 0.01, %v324_v59  ;;  %vm334_vm2 = vcmp.ge.f32.partialorder %v324_v59, 0.0 }
 0x2a2   :  { %v350_v0 = vsel %vm334_vm2, %v324_v59, %v342_v61 }
 0x2a5   :  { %v325_v60 = vpop.f32.mrf.mxu3 }
 0x2a6   :  { %v326_v62 = vadd.f32 %v830_v31, %v325_v60 }
 0x2a8   :  { %vm335_vm3 = vcmp.ge.f32.partialorder %v326_v62, 0.0  ;;  %v343_v63 = vmul.f32 0.01, %v326_v62 }
 0x2aa   :  { %v351_v5 = vsel %vm335_vm3, %v326_v62, %v343_v63 }
 0x2ab   :  { %v355_v6 = vpack.c.bf16 %v351_v5, %v350_v0 }
 0x2ad   :  { %780 = vmatmul.msk.bf16.gmra.mxu0 %vm286_vm11, %v355_v6 }
 0x2fa   :  { %v393_v7 = vpop.f32.mrf.mxu0 }
 0x302   :  { %v395_v8 = vpop.f32.mrf.mxu0 }
 0x303   :  { %v413_v18 = vpack.c.bf16 %v395_v8, %v393_v7 }
 0x30a   :  { %v398_v9 = vpop.f32.mrf.mxu0 }
 0x312   :  { %v400_v10 = vpop.f32.mrf.mxu0 }
 0x313   :  { %v414_v17 = vpack.c.bf16 %v400_v10, %v398_v9 }
 0x31a   :  { %v403_v11 = vpop.f32.mrf.mxu0 }
 0x322   :  { %v405_v12 = vpop.f32.mrf.mxu0 }
 0x323   :  { %v415_v16 = vpack.c.bf16 %v405_v12, %v403_v11 }
 0x32a   :  { %v408_v13 = vpop.f32.mrf.mxu0 }
 0x332   :  { %v410_v14 = vpop.f32.mrf.mxu0 }
 0x333   :  { %v416_v15 = vpack.c.bf16 %v410_v14, %v408_v13 }
 0x335   :  { %425 = vmatpush.bf16.msra.mxu1 %v416_v15 }
 0x339   :  { %426 = vmatpush.bf16.msra.mxu1 %v415_v16 }
 0x33d   :  { %427 = vmatpush.bf16.msra.mxu1 %v414_v17 }
 0x341   :  { %428 = vmatpush.bf16.msra.mxu1 %v413_v18 }
 0x344   :  { %781 = vmatmul.msk.bf16.vlgmr.msra.gmra.mxu1 %vm220_vm10, %v987_v1 }
 0x354   :  { %782 = vmatmul.msk.bf16.gmra.mxu1 %vm220_vm10, %v994_v2 }
 0x364   :  { %783 = vmatmul.msk.bf16.gmra.mxu1 %vm220_vm10, %v1001_v3 }
 0x374   :  { %784 = vmatmul.msk.bf16.gmra.mxu1 %vm220_vm10, %v1008_v4 }
 0x3c1   :  { %v430_v21 = vpop.f32.mrf.mxu1 }
 0x3c2   :  { %v431_v24 = vadd.f32 %v831_v22, %v430_v21 }
 0x3c9   :  { %v432_v23 = vpop.f32.mrf.mxu1 }
 0x3ca   :  { %v433_v25 = vadd.f32 %v831_v22, %v432_v23 }
 0x3cc   :  { %v450_v26 = vpack.c.bf16 %v433_v25, %v431_v24 }
 0x3ce   :  { %793 = vmatmul.msk.bf16.vlgmr.msra.gmra.mxu3 %vm286_vm11, %v450_v26 }
 0x3d1   :  { %v435_v27 = vpop.f32.mrf.mxu1 }
 0x3d2   :  { %v436_v29 = vadd.f32 %v831_v22, %v435_v27 }
 0x3d9   :  { %v437_v28 = vpop.f32.mrf.mxu1 }
 0x3da   :  { %v438_v30 = vadd.f32 %v831_v22, %v437_v28 }
 0x3dc   :  { %v451_v31 = vpack.c.bf16 %v438_v30, %v436_v29 }
 0x3de   :  { %794 = vmatmul.msk.bf16.gmra.mxu3 %vm286_vm11, %v451_v31 }
 0x3e1   :  { %v440_v32 = vpop.f32.mrf.mxu1 }
 0x3e2   :  { %v441_v34 = vadd.f32 %v831_v22, %v440_v32 }
 0x3e9   :  { %v442_v33 = vpop.f32.mrf.mxu1 }
 0x3ea   :  { %v443_v35 = vadd.f32 %v831_v22, %v442_v33  ;;  %v833_v33 = vld [vmem:[%s1120_s13] ss:$0 sm:$0xff] }
 0x3ec   :  { %v452_v36 = vpack.c.bf16 %v443_v35, %v441_v34 }
 0x3ee   :  { %795 = vmatmul.msk.bf16.gmra.mxu3 %vm286_vm11, %v452_v36 }
 0x3f1   :  { %v445_v37 = vpop.f32.mrf.mxu1 }
 0x3f2   :  { %v446_v39 = vadd.f32 %v831_v22, %v445_v37 }
 0x3f9   :  { %v447_v38 = vpop.f32.mrf.mxu1 }
 0x3fa   :  { %v448_v40 = vadd.f32 %v831_v22, %v447_v38 }
 0x3fc   :  { %v453_v41 = vpack.c.bf16 %v448_v40, %v446_v39 }
 0x3fe   :  { %796 = vmatmul.msk.bf16.gmra.mxu3 %vm286_vm11, %v453_v41 }
 0x451   :  { %v495_v44 = vpop.f32.mrf.mxu3 }
 0x452   :  { %v496_v46 = vadd.f32 %v832_v45, %v495_v44 }
 0x454   :  { %v523_v48 = vmul.f32 0.01, %v496_v46  ;;  %vm515_vm4 = vcmp.ge.f32.partialorder %v496_v46, 0.0 }
 0x456   :  { %v531_v51 = vsel %vm515_vm4, %v496_v46, %v523_v48 }
 0x459   :  { %v497_v47 = vpop.f32.mrf.mxu3 }
 0x45a   :  { %v498_v49 = vadd.f32 %v832_v45, %v497_v47 }
 0x45c   :  { %vm516_vm5 = vcmp.ge.f32.partialorder %v498_v49, 0.0  ;;  %v524_v50 = vmul.f32 0.01, %v498_v49 }
 0x45e   :  { %v532_v52 = vsel %vm516_vm5, %v498_v49, %v524_v50 }
 0x45f   :  { %v539_v53 = vpack.c.bf16 %v532_v52, %v531_v51 }
 0x461   :  { %v500_v54 = vpop.f32.mrf.mxu3  ;;  %805 = vmatmul.msk.bf16.vlgmr.msra.gmra.mxu2 %vm286_vm11, %v539_v53 }
 0x462   :  { %v501_v55 = vadd.f32 %v832_v45, %v500_v54 }
 0x464   :  { %v525_v57 = vmul.f32 0.01, %v501_v55  ;;  %vm517_vm6 = vcmp.ge.f32.partialorder %v501_v55, 0.0 }
 0x466   :  { %v533_v60 = vsel %vm517_vm6, %v501_v55, %v525_v57 }
 0x469   :  { %v502_v56 = vpop.f32.mrf.mxu3 }
 0x46a   :  { %v503_v58 = vadd.f32 %v832_v45, %v502_v56 }
 0x46c   :  { %vm518_vm7 = vcmp.ge.f32.partialorder %v503_v58, 0.0  ;;  %v526_v59 = vmul.f32 0.01, %v503_v58 }
 0x46e   :  { %v534_v61 = vsel %vm518_vm7, %v503_v58, %v526_v59 }
 0x46f   :  { %v540_v62 = vpack.c.bf16 %v534_v61, %v533_v60 }
 0x471   :  { %v505_v63 = vpop.f32.mrf.mxu3  ;;  %806 = vmatmul.msk.bf16.gmra.mxu2 %vm286_vm11, %v540_v62 }
 0x472   :  { %v506_v0 = vadd.f32 %v832_v45, %v505_v63 }
 0x474   :  { %v527_v6 = vmul.f32 0.01, %v506_v0  ;;  %vm519_vm8 = vcmp.ge.f32.partialorder %v506_v0, 0.0 }
 0x476   :  { %v535_v9 = vsel %vm519_vm8, %v506_v0, %v527_v6 }
 0x479   :  { %v507_v5 = vpop.f32.mrf.mxu3 }
 0x47a   :  { %v508_v7 = vadd.f32 %v832_v45, %v507_v5 }
 0x47c   :  { %vm520_vm9 = vcmp.ge.f32.partialorder %v508_v7, 0.0  ;;  %v528_v8 = vmul.f32 0.01, %v508_v7 }
 0x47e   :  { %v536_v10 = vsel %vm520_vm9, %v508_v7, %v528_v8 }
 0x47f   :  { %v541_v11 = vpack.c.bf16 %v536_v10, %v535_v9 }
 0x481   :  { %v510_v12 = vpop.f32.mrf.mxu3  ;;  %807 = vmatmul.msk.bf16.gmra.mxu2 %vm286_vm11, %v541_v11 }
 0x482   :  { %v511_v13 = vadd.f32 %v832_v45, %v510_v12 }
 0x484   :  { %v529_v15 = vmul.f32 0.01, %v511_v13  ;;  %vm521_vm12 = vcmp.ge.f32.partialorder %v511_v13, 0.0 }
 0x486   :  { %v537_v18 = vsel %vm521_vm12, %v511_v13, %v529_v15 }
 0x489   :  { %v512_v14 = vpop.f32.mrf.mxu3 }
 0x48a   :  { %v513_v16 = vadd.f32 %v832_v45, %v512_v14 }
 0x48c   :  { %vm522_vm13 = vcmp.ge.f32.partialorder %v513_v16, 0.0  ;;  %v530_v17 = vmul.f32 0.01, %v513_v16 }
 0x48e   :  { %v538_v19 = vsel %vm522_vm13, %v513_v16, %v530_v17 }
 0x48f   :  { %v542_v20 = vpack.c.bf16 %v538_v19, %v537_v18 }
 0x491   :  { %808 = vmatmul.msk.bf16.gmra.mxu2 %vm286_vm11, %v542_v20 }
 0x4e4   :  { %v580_v21 = vpop.f32.mrf.mxu2 }
 0x4ec   :  { %v582_v22 = vpop.f32.mrf.mxu2 }
 0x4ed   :  { %v600_v32 = vpack.c.bf16 %v582_v22, %v580_v21 }
 0x4f4   :  { %v585_v23 = vpop.f32.mrf.mxu2 }
 0x4fc   :  { %v587_v24 = vpop.f32.mrf.mxu2 }
 0x4fd   :  { %v601_v31 = vpack.c.bf16 %v587_v24, %v585_v23 }
 0x504   :  { %v590_v25 = vpop.f32.mrf.mxu2 }
 0x50c   :  { %v592_v26 = vpop.f32.mrf.mxu2 }
 0x50d   :  { %v602_v30 = vpack.c.bf16 %v592_v26, %v590_v25 }
 0x514   :  { %v595_v27 = vpop.f32.mrf.mxu2 }
 0x51c   :  { %v597_v28 = vpop.f32.mrf.mxu2 }
 0x51d   :  { %v603_v29 = vpack.c.bf16 %v597_v28, %v595_v27 }
 0x51f   :  { %612 = vmatpush.bf16.msra.mxu0 %v603_v29 }
 0x523   :  { %613 = vmatpush.bf16.msra.mxu0 %v602_v30 }
 0x527   :  { %614 = vmatpush.bf16.msra.mxu0 %v601_v31 }
 0x52b   :  { %615 = vmatpush.bf16.msra.mxu0 %v600_v32 }
 0x52e   :  { %809 = vmatmul.msk.bf16.vlgmr.msra.gmra.mxu0 %vm220_vm10, %v987_v1 }
 0x53e   :  { %810 = vmatmul.msk.bf16.gmra.mxu0 %vm220_vm10, %v994_v2 }
 0x54e   :  { %811 = vmatmul.msk.bf16.gmra.mxu0 %vm220_vm10, %v1001_v3 }
 0x55e   :  { %812 = vmatmul.msk.bf16.gmra.mxu0 %vm220_vm10, %v1008_v4 }
 0x5ab   :  { %v617_v34 = vpop.f32.mrf.mxu0 }
 0x5ac   :  { %v618_v35 = vadd.f32 %v833_v33, %v617_v34 }
 0x5ae   :  { %637 = vmax.xlane.f32.xlu0 %v618_v35 }
 0x5b3   :  { %v619_v36 = vpop.f32.mrf.mxu0 }
 0x5b4   :  { %v620_v37 = vadd.f32 %v833_v33, %v619_v36 }
 0x5b6   :  { %639 = vmax.xlane.f32.xlu0 %v620_v37 }
 0x5bb   :  { %v622_v1 = vpop.f32.mrf.mxu0 }
 0x5bc   :  { %v623_v38 = vadd.f32 %v833_v33, %v622_v1 }
 0x5be   :  { %641 = vmax.xlane.f32.xlu1 %v623_v38 }
 0x5c3   :  { %v624_v2 = vpop.f32.mrf.mxu0 }
 0x5c4   :  { %v625_v39 = vadd.f32 %v833_v33, %v624_v2 }
 0x5c6   :  { %643 = vmax.xlane.f32.xlu1 %v625_v39 }
 0x5cb   :  { %v627_v3 = vpop.f32.mrf.mxu0 }
 0x5cc   :  { %v628_v40 = vadd.f32 %v833_v33, %v627_v3 }
 0x5ce   :  { %645 = vmax.xlane.f32.xlu2 %v628_v40 }
 0x5d3   :  { %v629_v4 = vpop.f32.mrf.mxu0 }
 0x5d4   :  { %v630_v41 = vadd.f32 %v833_v33, %v629_v4 }
 0x5d6   :  { %647 = vmax.xlane.f32.xlu2 %v630_v41 }
 0x5db   :  { %v632_v42 = vpop.f32.mrf.mxu0 }
 0x5dc   :  { %v633_v43 = vadd.f32 %v833_v33, %v632_v42 }
 0x5de   :  { %649 = vmax.xlane.f32.xlu0 %v633_v43 }
 0x5e3   :  { %v634_v44 = vpop.f32.mrf.mxu0 }
 0x5e4   :  { %v635_v45 = vadd.f32 %v833_v33, %v634_v44 }
 0x5e6   :  { %651 = vmax.xlane.f32.xlu1 %v635_v45 }
 0x621   :  { %v638_v46 = vpop.xlane.xlu0 %637 }
 0x622   :  { %v653_v47 = vsub.f32 %v618_v35, %v638_v46 }
 0x624   :  { %v661_v48 = vmul.f32 1.442695, %v653_v47 }
 0x626   :  { %834 = vpow2.f32 %v661_v48 }
 0x629   :  { %v640_v49 = vpop.xlane.xlu0 %639 }
 0x62a   :  { %v654_v50 = vsub.f32 %v620_v37, %v640_v49 }
 0x62c   :  { %v835_v51 = vpop.eup %834  ;;  %v663_v52 = vmul.f32 1.442695, %v654_v50 }
 0x62d   :  { %677 = vadd.xlane.f32.xlu2 %v835_v51 }
 0x62e   :  { %836 = vpow2.f32 %v663_v52 }
 0x631   :  { %v642_v53 = vpop.xlane.xlu1 %641 }
 0x632   :  { %v655_v54 = vsub.f32 %v623_v38, %v642_v53 }
 0x634   :  { %v837_v55 = vpop.eup %836  ;;  %v665_v56 = vmul.f32 1.442695, %v655_v54 }
 0x635   :  { %679 = vadd.xlane.f32.xlu0 %v837_v55 }
 0x636   :  { %838 = vpow2.f32 %v665_v56 }
 0x639   :  { %v644_v57 = vpop.xlane.xlu1 %643 }
 0x63a   :  { %v656_v58 = vsub.f32 %v625_v39, %v644_v57 }
 0x63c   :  { %v839_v59 = vpop.eup %838  ;;  %v667_v60 = vmul.f32 1.442695, %v656_v58 }
 0x63d   :  { %681 = vadd.xlane.f32.xlu1 %v839_v59 }
 0x63e   :  { %840 = vpow2.f32 %v667_v60 }
 0x641   :  { %v646_v61 = vpop.xlane.xlu2 %645 }
 0x642   :  { %v657_v62 = vsub.f32 %v628_v40, %v646_v61 }
 0x644   :  { %v841_v63 = vpop.eup %840  ;;  %v669_v0 = vmul.f32 1.442695, %v657_v62 }
 0x645   :  { %683 = vadd.xlane.f32.xlu2 %v841_v63 }
 0x646   :  { %842 = vpow2.f32 %v669_v0 }
 0x649   :  { %v648_v5 = vpop.xlane.xlu2 %647 }
 0x64a   :  { %v658_v6 = vsub.f32 %v630_v41, %v648_v5 }
 0x64c   :  { %v843_v7 = vpop.eup %842  ;;  %v671_v8 = vmul.f32 1.442695, %v658_v6 }
 0x64d   :  { %685 = vadd.xlane.f32.xlu0 %v843_v7 }
 0x64e   :  { %844 = vpow2.f32 %v671_v8 }
 0x651   :  { %v650_v9 = vpop.xlane.xlu0 %649 }
 0x652   :  { %v659_v10 = vsub.f32 %v633_v43, %v650_v9 }
 0x654   :  { %v845_v11 = vpop.eup %844  ;;  %v673_v12 = vmul.f32 1.442695, %v659_v10 }
 0x655   :  { %687 = vadd.xlane.f32.xlu1 %v845_v11 }
 0x656   :  { %846 = vpow2.f32 %v673_v12 }
 0x659   :  { %v652_v13 = vpop.xlane.xlu1 %651 }
 0x65a   :  { %v660_v14 = vsub.f32 %v635_v45, %v652_v13 }
 0x65c   :  { %v847_v15 = vpop.eup %846  ;;  %v675_v16 = vmul.f32 1.442695, %v660_v14 }
 0x65d   :  { %689 = vadd.xlane.f32.xlu2 %v847_v15 }
 0x65e   :  { %848 = vpow2.f32 %v675_v16 }
 0x664   :  { %v849_v17 = vpop.eup %848 }
 0x665   :  { %691 = vadd.xlane.f32.xlu0 %v849_v17 }
 0x6a0   :  { %v678_v18 = vpop.xlane.xlu2 %677 }
 0x6a1   :  { %850 = vlog2.f32 %v678_v18 }
 0x6a7   :  { %v851_v19 = vpop.eup %850 }
 0x6a8   :  { %v694_v20 = vmul.f32 0.6931472, %v851_v19  ;;  %v680_v21 = vpop.xlane.xlu0 %679 }
 0x6a9   :  { %852 = vlog2.f32 %v680_v21 }
 0x6aa   :  { %v709_v22 = vsub.f32 %v653_v47, %v694_v20 }
 0x6ac   :  { %717 = vst [vmem:[%s1121_s14] sm:$0xff] %v709_v22 }
 0x6af   :  { %v853_v23 = vpop.eup %852 }
 0x6b0   :  { %v696_v24 = vmul.f32 0.6931472, %v853_v23  ;;  %v682_v25 = vpop.xlane.xlu1 %681 }
 0x6b1   :  { %854 = vlog2.f32 %v682_v25 }
 0x6b2   :  { %v710_v26 = vsub.f32 %v654_v50, %v696_v24 }
 0x6b4   :  { %718 = vst [vmem:[%s1121_s14 + $0x8] sm:$0xff] %v710_v26 }
 0x6b7   :  { %v855_v27 = vpop.eup %854 }
 0x6b8   :  { %v698_v28 = vmul.f32 0.6931472, %v855_v27  ;;  %v684_v29 = vpop.xlane.xlu2 %683 }
 0x6b9   :  { %856 = vlog2.f32 %v684_v29 }
 0x6ba   :  { %v711_v30 = vsub.f32 %v655_v54, %v698_v28 }
 0x6bc   :  { %719 = vst [vmem:[%s1121_s14 + $0x10] sm:$0xff] %v711_v30 }
 0x6bf   :  { %v857_v31 = vpop.eup %856 }
 0x6c0   :  { %v700_v32 = vmul.f32 0.6931472, %v857_v31  ;;  %v686_v33 = vpop.xlane.xlu0 %685 }
 0x6c1   :  { %858 = vlog2.f32 %v686_v33 }
 0x6c2   :  { %v712_v34 = vsub.f32 %v656_v58, %v700_v32 }
 0x6c4   :  { %720 = vst [vmem:[%s1121_s14 + $0x18] sm:$0xff] %v712_v34 }
 0x6c7   :  { %v859_v35 = vpop.eup %858 }
 0x6c8   :  { %v702_v36 = vmul.f32 0.6931472, %v859_v35  ;;  %v688_v37 = vpop.xlane.xlu1 %687 }
 0x6c9   :  { %860 = vlog2.f32 %v688_v37 }
 0x6ca   :  { %v713_v1 = vsub.f32 %v657_v62, %v702_v36 }
 0x6cc   :  { %721 = vst [vmem:[%s1121_s14 + $0x20] sm:$0xff] %v713_v1 }
 0x6cf   :  { %v861_v38 = vpop.eup %860 }
 0x6d0   :  { %v704_v2 = vmul.f32 0.6931472, %v861_v38  ;;  %v690_v39 = vpop.xlane.xlu2 %689 }
 0x6d1   :  { %862 = vlog2.f32 %v690_v39 }
 0x6d2   :  { %v714_v3 = vsub.f32 %v658_v6, %v704_v2 }
 0x6d4   :  { %722 = vst [vmem:[%s1121_s14 + $0x28] sm:$0xff] %v714_v3 }
 0x6d7   :  { %v863_v40 = vpop.eup %862 }
 0x6d8   :  { %v706_v4 = vmul.f32 0.6931472, %v863_v40  ;;  %v692_v41 = vpop.xlane.xlu0 %691 }
 0x6d9   :  { %864 = vlog2.f32 %v692_v41 }
 0x6da   :  { %v715_v42 = vsub.f32 %v659_v10, %v706_v4 }
 0x6dc   :  { %723 = vst [vmem:[%s1121_s14 + $0x30] sm:$0xff] %v715_v42 }
 0x6df   :  { %v865_v43 = vpop.eup %864 }
 0x6e0   :  { %v708_v44 = vmul.f32 0.6931472, %v865_v43 }
 0x6e2   :  { %v716_v45 = vsub.f32 %v660_v14, %v708_v44 }
 0x6e4   :  { %724 = vst [vmem:[%s1121_s14 + $0x38] sm:$0xff] %v716_v45 }

</bundles_post_ra>
